<compile_context>
chip_gen: v7x
topology: tpu7x:2x2x1
jax: 0.10.0
libtpu: 0.0.40
codegen_flags: <defaults>
</compile_context>

<pallas_src>
import functools

import jax
import jax.numpy as jnp
from jax.experimental import pallas as pl
from jax.experimental.pallas import tpu as pltpu

LN_EPS = 1e-5
_MiB = 1024 * 1024


def _round_up(x, m):
    return ((x + m - 1) // m) * m


def _tpu_info():
    """Returns (per-core VMEM bytes, TensorCores per chip) with safe fallbacks."""
    vmem_cap = 64 * _MiB            # conservative (v7x-sized) default
    num_tc = 1
    try:
        vmem_cap = int(pltpu.get_tpu_info().vmem_capacity_bytes)
    except Exception:
        pass
    try:
        kind = jax.devices()[0].device_kind.lower()
    except Exception:
        kind = ""
    if "v7" in kind:
        num_tc = 2
    return vmem_cap, num_tc


def _patch_merging_kernel(x_ref, w_ref, g_ref, b_ref, o_ref, *, n_valid, eps):
    # x_ref: (tm, K_pad)    merged-token block
    # w_ref: (K_pad, N_pad) reduction weight (transposed vs torch), zero-padded
    # g_ref: (1, N_pad)     LayerNorm gamma (f32, zero-padded)
    # b_ref: (1, N_pad)     LayerNorm beta  (f32, zero-padded)
    # o_ref: (tm, N_pad)    output block
    x = x_ref[...]
    if x.dtype != w_ref.dtype:
        # bf16 MXU-operand path: cast activations on-chip (VPU has slack here).
        x = x.astype(w_ref.dtype)

    # Linear (no bias) on the MXU, f32 accumulation.
    y = jnp.dot(x, w_ref[...], preferred_element_type=jnp.float32)

    # Fused LayerNorm over the *true* channel count.  Padded columns of y are
    # exactly zero (W columns are zero-padded), so the mean sum is unaffected;
    # the centered term is lane-masked only when channel padding exists.
    inv_n = 1.0 / float(n_valid)
    mean = jnp.sum(y, axis=-1, keepdims=True) * inv_n
    centered = y - mean
    if y.shape[-1] != n_valid:
        col = jax.lax.broadcasted_iota(jnp.int32, y.shape, dimension=1)
        centered = jnp.where(col < n_valid, centered, 0.0)
    var = jnp.sum(centered * centered, axis=-1, keepdims=True) * inv_n
    y_norm = centered * jax.lax.rsqrt(var + eps)

    o_ref[...] = (y_norm * g_ref[...] + b_ref[...]).astype(o_ref.dtype)


def prepare_patch_merging_params(w_red, gamma, beta, *, matmul_dtype):
    """One-time host-side parameter prep (keep OUT of the per-call hot path).

    w_red: (2C, 4C) torch Linear weight (y = x @ w_red^T); gamma/beta: (2C,).
    Returns (wt, g2, b2): transposed, zero-padded to lane multiples of 128,
    weight cast to `matmul_dtype` (the kernel casts x to match it).
    """
    n_out, k_in = w_red.shape
    K_pad = _round_up(k_in, 128)
    N_pad = _round_up(n_out, 128)
    wt = jnp.pad(jnp.transpose(w_red).astype(matmul_dtype),
                 ((0, K_pad - k_in), (0, N_pad - n_out)))
    g2 = jnp.pad(gamma.astype(jnp.float32), (0, N_pad - n_out)).reshape(1, N_pad)
    b2 = jnp.pad(beta.astype(jnp.float32), (0, N_pad - n_out)).reshape(1, N_pad)
    return wt, g2, b2


def _build_call(*, M, K_pad, N_pad, n_valid, tm, grid, out_dtype,
                vmem_limit, cost, single_buffer_consts):
    const_kwargs = {}
    if single_buffer_consts:
        # Grid-invariant operands: single-buffer them (no dead double buffer).
        const_kwargs = dict(pipeline_mode=pl.Buffered(1))
    kernel = functools.partial(_patch_merging_kernel, n_valid=n_valid, eps=LN_EPS)
    return pl.pallas_call(
        kernel,
        out_shape=jax.ShapeDtypeStruct((M, N_pad), out_dtype),
        grid_spec=pltpu.PrefetchScalarGridSpec(
            num_scalar_prefetch=0,
            grid=grid,
            in_specs=[
                pl.BlockSpec((tm, K_pad), lambda i: (i, 0)),
                pl.BlockSpec((K_pad, N_pad), lambda i: (0, 0), **const_kwargs),
                pl.BlockSpec((1, N_pad), lambda i: (0, 0), **const_kwargs),
                pl.BlockSpec((1, N_pad), lambda i: (0, 0), **const_kwargs),
            ],
            out_specs=pl.BlockSpec((tm, N_pad), lambda i: (i, 0)),
        ),
        compiler_params=pltpu.CompilerParams(
            dimension_semantics=("parallel",),
            vmem_limit_bytes=vmem_limit,
        ),
        cost_estimate=cost,
    )


def patch_merging(x, wt, g2, b2, *, tm_target=1024):
    """x: (B, L, C); (wt, g2, b2) from prepare_patch_merging_params.

    Returns (B, L//4, 2C) in x.dtype.
    """
    B, L, C = x.shape
    assert L % 4 == 0, "sequence length must be divisible by 4"
    K, N = 4 * C, 2 * C
    M = B * (L // 4)
    K_pad, N_pad = wt.shape
    assert K_pad == _round_up(K, 128) and N_pad == _round_up(N, 128), "param prep mismatch"

    dtype = x.dtype
    x_item = jnp.dtype(dtype).itemsize
    w_item = jnp.dtype(wt.dtype).itemsize
    sub = {4: 8, 2: 16, 1: 32}[x_item]            # sublane granularity of x blocks

    vmem_cap, num_tc = _tpu_info()
    budget = max(24 * _MiB, vmem_cap - 16 * _MiB)  # ~48 MiB on v7x, ~112 MiB on v5e/v6e

    def blk_bytes(t):
        b = 2 * t * K_pad * x_item                 # x block, double-buffered
        b += K_pad * N_pad * w_item                # weight, single-buffered
        b += 2 * N_pad * 4                         # gamma/beta (f32), single-buffered
        b += 2 * t * N_pad * x_item                # out block, double-buffered
        b += 3 * t * N_pad * 4                     # f32 intermediates (y, centered, ...)
        if w_item != x_item:
            b += t * K_pad * w_item                # in-kernel cast copy of x
        return b

    # Row-tile selection: largest tile under the per-generation VMEM budget.
    tm = min(_round_up(tm_target, sub), _round_up(M, sub))
    while tm > sub and blk_bytes(tm) > budget:
        tm = max(sub, _round_up(tm // 2, sub))
    if tm > M:
        tm = M            # block equal to the full (short) row dim is always legal

    # Only multi-TC chips (v7x) benefit from splitting a resident block:
    # aim for >= 2 grid steps per TensorCore (prefetch overlap) when M allows.
    if num_tc > 1 and M >= 2 * sub:
        want = 2 * num_tc if M >= 2 * num_tc * sub else num_tc
        if pl.cdiv(M, tm) < want:
            tm = max(sub, (pl.cdiv(M, want) // sub) * sub)

    grid = (pl.cdiv(M, tm),)                       # ragged last block is fine: rows are
                                                   # independent; OOB writes are dropped.

    # Token merge == plain reshape (groups of 4 consecutive tokens).
    x2d = x.reshape(M, K)
    # For standard Swin widths C % 32 == 0 so K is already a multiple of 128 and
    # no activation copy happens; this pad only triggers for unusual widths.
    if K_pad != K:
        x2d = jnp.pad(x2d, ((0, 0), (0, K_pad - K)))

    vmem_limit = int(min(vmem_cap - 8 * _MiB,
                         max(32 * _MiB,
                             blk_bytes(tm) + K_pad * N_pad * w_item + 4 * _MiB)))

    cost = pl.CostEstimate(
        flops=2 * M * K_pad * N_pad,
        transcendentals=0,
        bytes_accessed=(M * K_pad * x_item + K_pad * N_pad * w_item
                        + 2 * N_pad * 4 + M * N_pad * x_item),
    )

    call_kwargs = dict(M=M, K_pad=K_pad, N_pad=N_pad, n_valid=N, tm=tm, grid=grid,
                       out_dtype=dtype, vmem_limit=vmem_limit, cost=cost)
    try:
        out = _build_call(single_buffer_consts=True, **call_kwargs)(x2d, wt, g2, b2)
    except Exception:
        # Compatibility fallback for Pallas versions that reject single-buffered
        # pipeline_mode on constant operands (costs one extra weight buffer).
        out = _build_call(single_buffer_consts=False, **call_kwargs)(x2d, wt, g2, b2)

    return out[:, :N].reshape(B, L // 4, N)


def reference(x, w_red, gamma, beta):
    B, L, C = x.shape
    xm = x.reshape(B, L // 4, 4 * C).astype(jnp.float32)
    y = jnp.einsum("blk,nk->bln", xm, w_red.astype(jnp.float32))
    mean = jnp.mean(y, axis=-1, keepdims=True)
    var = jnp.mean((y - mean) ** 2, axis=-1, keepdims=True)
    yn = (y - mean) * jax.lax.rsqrt(var + LN_EPS)
    return yn * gamma + beta


if __name__ == "__main__":
    # Small shapes consistent with the module: B=2, L=32 tokens, dim=C=32.
    B, L, dim = 2, 32, 32
    key = jax.random.PRNGKey(0)
    kx, kw = jax.random.split(key)

    x = jax.random.normal(kx, (B, L, dim), dtype=jnp.float32)

    # Deterministic synthetic parameters (reduction has no bias):
    #   reduction.weight: (2*dim, 4*dim); norm.weight = ones; norm.bias = zeros.
    w_red = 0.02 * jax.random.normal(kw, (2 * dim, 4 * dim), dtype=jnp.float32)
    gamma = jnp.ones((2 * dim,), dtype=jnp.float32)
    beta = jnp.zeros((2 * dim,), dtype=jnp.float32)

    ref = reference(x, w_red, gamma, beta)

    # f32 MXU-operand path (exact parity with the PyTorch module).
    wt, g2, b2 = prepare_patch_merging_params(w_red, gamma, beta,
                                              matmul_dtype=jnp.float32)
    out = jax.block_until_ready(patch_merging(x, wt, g2, b2))
    assert out.shape == (B, L // 4, 2 * dim), out.shape
    assert jnp.allclose(out, ref.astype(out.dtype), atol=3e-5, rtol=3e-5)

    # Optional bf16 MXU-operand path (f32 accumulation / LayerNorm) — the big
    # matmul-throughput win on v6e/v7x for large C; validated at bf16 tolerance.
    wt16, g2b, b2b = prepare_patch_merging_params(w_red, gamma, beta,
                                                  matmul_dtype=jnp.bfloat16)
    out16 = jax.block_until_ready(patch_merging(x, wt16, g2b, b2b))
    assert out16.shape == (B, L // 4, 2 * dim), out16.shape
    assert jnp.allclose(out16, ref.astype(out16.dtype), atol=1e-1, rtol=1e-1)

    print("KERNEL_OK")
</pallas_src>

<mosaic_0001>
module attributes {stable_mosaic.version = 11 : i64} {
  func.func @_patch_merging_kernel(%arg0: i32, %arg1: memref<16x128xf32, #tpu.memory_space<vmem>>, %arg2: memref<128x128xf32, #tpu.memory_space<vmem>>, %arg3: memref<1x128xf32, #tpu.memory_space<vmem>>, %arg4: memref<1x128xf32, #tpu.memory_space<vmem>>, %arg5: memref<16x128xf32, #tpu.memory_space<vmem>>) attributes {dimension_semantics = [#tpu.dimension_semantics<parallel>], iteration_bounds = array<i64: 1>, scalar_prefetch = 0 : i64, scratch_operands = 0 : i64, tpu.core_type = #tpu.core_type<tc>, window_params = [{transform_indices = @transform_0, window_bounds = array<i64: 16, 128>}, {pipeline_mode = #tpu.pipeline_mode<synchronous>, transform_indices = @transform_1, window_bounds = array<i64: 128, 128>}, {pipeline_mode = #tpu.pipeline_mode<synchronous>, transform_indices = @transform_2, window_bounds = array<i64: 1, 128>}, {pipeline_mode = #tpu.pipeline_mode<synchronous>, transform_indices = @transform_3, window_bounds = array<i64: 1, 128>}, {transform_indices = @transform_4, window_bounds = array<i64: 16, 128>}]} {
    %c0 = arith.constant 0 : index
    %c0_0 = arith.constant 0 : index
    %0 = vector.load %arg1[%c0, %c0_0] : memref<16x128xf32, #tpu.memory_space<vmem>>, vector<16x128xf32>
    %c0_1 = arith.constant 0 : index
    %c0_2 = arith.constant 0 : index
    %1 = vector.load %arg2[%c0_1, %c0_2] : memref<128x128xf32, #tpu.memory_space<vmem>>, vector<128x128xf32>
    %cst = arith.constant dense<0.000000e+00> : vector<16x128xf32>
    %2 = tpu.matmul %0, %1, %cst {dimension_numbers = #tpu.dot_dimension_numbers<[1], [0], [0], [1], [0, 0, 1, 1], [], []>} : vector<16x128xf32>, vector<128x128xf32>, vector<16x128xf32> -> vector<16x128xf32>
    %cst_3 = arith.constant dense<0.000000e+00> : vector<16xf32>
    %3 = vector.multi_reduction <add>, %2, %cst_3 [1] : vector<16x128xf32> to vector<16xf32>
    %4 = vector.shape_cast %3 : vector<16xf32> to vector<16x1xf32>
    %cst_4 = arith.constant 1.562500e-02 : f32
    %5 = vector.broadcast %cst_4 : f32 to vector<16x1xf32>
    %6 = arith.mulf %4, %5 : vector<16x1xf32>
    %7 = vector.broadcast %6 : vector<16x1xf32> to vector<16x128xf32>
    %8 = arith.subf %2, %7 : vector<16x128xf32>
    %9 = tpu.iota {dimensions = array<i32: 1>} : vector<16x128xi32>
    %c64_i32 = arith.constant 64 : i32
    %10 = vector.broadcast %c64_i32 : i32 to vector<16x128xi32>
    %11 = arith.cmpi slt, %9, %10 : vector<16x128xi32>
    %cst_5 = arith.constant 0.000000e+00 : f32
    %12 = vector.broadcast %cst_5 : f32 to vector<16x128xf32>
    %13 = arith.select %11, %8, %12 : vector<16x128xi1>, vector<16x128xf32>
    %14 = arith.mulf %13, %13 : vector<16x128xf32>
    %cst_6 = arith.constant dense<0.000000e+00> : vector<16xf32>
    %15 = vector.multi_reduction <add>, %14, %cst_6 [1] : vector<16x128xf32> to vector<16xf32>
    %16 = vector.shape_cast %15 : vector<16xf32> to vector<16x1xf32>
    %cst_7 = arith.constant 1.562500e-02 : f32
    %17 = vector.broadcast %cst_7 : f32 to vector<16x1xf32>
    %18 = arith.mulf %16, %17 : vector<16x1xf32>
    %cst_8 = arith.constant 9.99999974E-6 : f32
    %19 = vector.broadcast %cst_8 : f32 to vector<16x1xf32>
    %20 = arith.addf %18, %19 : vector<16x1xf32>
    %21 = math.rsqrt %20 : vector<16x1xf32>
    %22 = vector.broadcast %21 : vector<16x1xf32> to vector<16x128xf32>
    %23 = arith.mulf %13, %22 : vector<16x128xf32>
    %c0_9 = arith.constant 0 : index
    %c0_10 = arith.constant 0 : index
    %24 = vector.load %arg3[%c0_9, %c0_10] : memref<1x128xf32, #tpu.memory_space<vmem>>, vector<1x128xf32>
    %25 = vector.broadcast %24 : vector<1x128xf32> to vector<16x128xf32>
    %26 = arith.mulf %23, %25 : vector<16x128xf32>
    %c0_11 = arith.constant 0 : index
    %c0_12 = arith.constant 0 : index
    %27 = vector.load %arg4[%c0_11, %c0_12] : memref<1x128xf32, #tpu.memory_space<vmem>>, vector<1x128xf32>
    %28 = vector.broadcast %27 : vector<1x128xf32> to vector<16x128xf32>
    %29 = arith.addf %26, %28 : vector<16x128xf32>
    %c0_13 = arith.constant 0 : index
    %c0_14 = arith.constant 0 : index
    %30 = vector.load %arg5[%c0_13, %c0_14] : memref<16x128xf32, #tpu.memory_space<vmem>>, vector<16x128xf32>
    tpu.vector_store %arg5[%c0_13, %c0_14], %29 {strides = array<i32>} : memref<16x128xf32, #tpu.memory_space<vmem>>, vector<16x128xf32>,
    return
  }
  func.func @transform_0(%arg0: i32) -> (i32, i32) {
    %c0_i32 = arith.constant 0 : i32
    %c0_i32_0 = arith.constant 0 : i32
    return %arg0, %c0_i32 : i32, i32
  }
  func.func @transform_1(%arg0: i32) -> (i32, i32) {
    %c0_i32 = arith.constant 0 : i32
    %c0_i32_0 = arith.constant 0 : i32
    %c0_i32_1 = arith.constant 0 : i32
    return %c0_i32, %c0_i32_0 : i32, i32
  }
  func.func @transform_2(%arg0: i32) -> (i32, i32) {
    %c0_i32 = arith.constant 0 : i32
    %c0_i32_0 = arith.constant 0 : i32
    %c0_i32_1 = arith.constant 0 : i32
    return %c0_i32, %c0_i32_0 : i32, i32
  }
  func.func @transform_3(%arg0: i32) -> (i32, i32) {
    %c0_i32 = arith.constant 0 : i32
    %c0_i32_0 = arith.constant 0 : i32
    %c0_i32_1 = arith.constant 0 : i32
    return %c0_i32, %c0_i32_0 : i32, i32
  }
  func.func @transform_4(%arg0: i32) -> (i32, i32) {
    %c0_i32 = arith.constant 0 : i32
    %c0_i32_0 = arith.constant 0 : i32
    return %arg0, %c0_i32 : i32, i32
  }
}

module attributes {stable_mosaic.version = 11 : i64} {
  func.func @_patch_merging_kernel(%arg0: i32, %arg1: memref<16x128xf32, #tpu.memory_space<vmem>>, %arg2: memref<128x128xf32, #tpu.memory_space<vmem>>, %arg3: memref<1x128xf32, #tpu.memory_space<vmem>>, %arg4: memref<1x128xf32, #tpu.memory_space<vmem>>, %arg5: memref<16x128xf32, #tpu.memory_space<vmem>>) attributes {dimension_semantics = [#tpu.dimension_semantics<parallel>], iteration_bounds = array<i64: 1>, scalar_prefetch = 0 : i64, scratch_operands = 0 : i64, tpu.core_type = #tpu.core_type<tc>, window_params = [{transform_indices = @transform_0, window_bounds = array<i64: 16, 128>}, {pipeline_mode = #tpu.pipeline_mode<synchronous>, transform_indices = @transform_1, window_bounds = array<i64: 128, 128>}, {pipeline_mode = #tpu.pipeline_mode<synchronous>, transform_indices = @transform_2, window_bounds = array<i64: 1, 128>}, {pipeline_mode = #tpu.pipeline_mode<synchronous>, transform_indices = @transform_3, window_bounds = array<i64: 1, 128>}, {transform_indices = @transform_4, window_bounds = array<i64: 16, 128>}]} {
    %c0 = arith.constant 0 : index
    %c0_0 = arith.constant 0 : index
    %0 = vector.load %arg1[%c0, %c0_0] : memref<16x128xf32, #tpu.memory_space<vmem>>, vector<16x128xf32>
    %c0_1 = arith.constant 0 : index
    %c0_2 = arith.constant 0 : index
    %1 = vector.load %arg2[%c0_1, %c0_2] : memref<128x128xf32, #tpu.memory_space<vmem>>, vector<128x128xf32>
    %cst = arith.constant dense<0.000000e+00> : vector<16x128xf32>
    %2 = tpu.matmul %0, %1, %cst {dimension_numbers = #tpu.dot_dimension_numbers<[1], [0], [0], [1], [0, 0, 1, 1], [], []>} : vector<16x128xf32>, vector<128x128xf32>, vector<16x128xf32> -> vector<16x128xf32>
    %cst_3 = arith.constant dense<0.000000e+00> : vector<16xf32>
    %3 = vector.multi_reduction <add>, %2, %cst_3 [1] : vector<16x128xf32> to vector<16xf32>
    %4 = vector.shape_cast %3 : vector<16xf32> to vector<16x1xf32>
    %cst_4 = arith.constant 1.562500e-02 : f32
    %5 = vector.broadcast %cst_4 : f32 to vector<16x1xf32>
    %6 = arith.mulf %4, %5 : vector<16x1xf32>
    %7 = vector.broadcast %6 : vector<16x1xf32> to vector<16x128xf32>
    %8 = arith.subf %2, %7 : vector<16x128xf32>
    %9 = tpu.iota {dimensions = array<i32: 1>} : vector<16x128xi32>
    %c64_i32 = arith.constant 64 : i32
    %10 = vector.broadcast %c64_i32 : i32 to vector<16x128xi32>
    %11 = arith.cmpi slt, %9, %10 : vector<16x128xi32>
    %cst_5 = arith.constant 0.000000e+00 : f32
    %12 = vector.broadcast %cst_5 : f32 to vector<16x128xf32>
    %13 = arith.select %11, %8, %12 : vector<16x128xi1>, vector<16x128xf32>
    %14 = arith.mulf %13, %13 : vector<16x128xf32>
    %cst_6 = arith.constant dense<0.000000e+00> : vector<16xf32>
    %15 = vector.multi_reduction <add>, %14, %cst_6 [1] : vector<16x128xf32> to vector<16xf32>
    %16 = vector.shape_cast %15 : vector<16xf32> to vector<16x1xf32>
    %cst_7 = arith.constant 1.562500e-02 : f32
    %17 = vector.broadcast %cst_7 : f32 to vector<16x1xf32>
    %18 = arith.mulf %16, %17 : vector<16x1xf32>
    %cst_8 = arith.constant 9.99999974E-6 : f32
    %19 = vector.broadcast %cst_8 : f32 to vector<16x1xf32>
    %20 = arith.addf %18, %19 : vector<16x1xf32>
    %21 = math.rsqrt %20 : vector<16x1xf32>
    %22 = vector.broadcast %21 : vector<16x1xf32> to vector<16x128xf32>
    %23 = arith.mulf %13, %22 : vector<16x128xf32>
    %c0_9 = arith.constant 0 : index
    %c0_10 = arith.constant 0 : index
    %24 = vector.load %arg3[%c0_9, %c0_10] : memref<1x128xf32, #tpu.memory_space<vmem>>, vector<1x128xf32>
    %25 = vector.broadcast %24 : vector<1x128xf32> to vector<16x128xf32>
    %26 = arith.mulf %23, %25 : vector<16x128xf32>
    %c0_11 = arith.constant 0 : index
    %c0_12 = arith.constant 0 : index
    %27 = vector.load %arg4[%c0_11, %c0_12] : memref<1x128xf32, #tpu.memory_space<vmem>>, vector<1x128xf32>
    %28 = vector.broadcast %27 : vector<1x128xf32> to vector<16x128xf32>
    %29 = arith.addf %26, %28 : vector<16x128xf32>
    %c0_13 = arith.constant 0 : index
    %c0_14 = arith.constant 0 : index
    %30 = vector.load %arg5[%c0_13, %c0_14] : memref<16x128xf32, #tpu.memory_space<vmem>>, vector<16x128xf32>
    tpu.vector_store %arg5[%c0_13, %c0_14], %29 {strides = array<i32>} : memref<16x128xf32, #tpu.memory_space<vmem>>, vector<16x128xf32>,
    return
  }
  func.func @transform_0(%arg0: i32) -> (i32, i32) {
    %c0_i32 = arith.constant 0 : i32
    %c0_i32_0 = arith.constant 0 : i32
    return %arg0, %c0_i32 : i32, i32
  }
  func.func @transform_1(%arg0: i32) -> (i32, i32) {
    %c0_i32 = arith.constant 0 : i32
    %c0_i32_0 = arith.constant 0 : i32
    %c0_i32_1 = arith.constant 0 : i32
    return %c0_i32, %c0_i32_0 : i32, i32
  }
  func.func @transform_2(%arg0: i32) -> (i32, i32) {
    %c0_i32 = arith.constant 0 : i32
    %c0_i32_0 = arith.constant 0 : i32
    %c0_i32_1 = arith.constant 0 : i32
    return %c0_i32, %c0_i32_0 : i32, i32
  }
  func.func @transform_3(%arg0: i32) -> (i32, i32) {
    %c0_i32 = arith.constant 0 : i32
    %c0_i32_0 = arith.constant 0 : i32
    %c0_i32_1 = arith.constant 0 : i32
    return %c0_i32, %c0_i32_0 : i32, i32
  }
  func.func @transform_4(%arg0: i32) -> (i32, i32) {
    %c0_i32 = arith.constant 0 : i32
    %c0_i32_0 = arith.constant 0 : i32
    return %arg0, %c0_i32 : i32, i32
  }
}

</mosaic_0001>

<bundles_post_ra>
// kernel: tpu_custom_call.1
= control target key start
LH: loop header
LB: loop body
LE: loop exit
PB: predicated region body
PF: predicated region fallthrough
CT: control target
= control target key end

     0   :  { %9 = vsyncpa [#allocation3], 0  ;;  %s453_s0 = inlined_call_operand.hbm [shape: f32[16,128], index: 0, kind: input, shape index: {}]   ;;  %s454_s1 = inlined_call_operand.hbm [shape: f32[128,128], index: 1, kind: input, shape index: {}]   ;;  %s455_s2 = inlined_call_operand.vmem [shape: f32[1,128], index: 2, kind: input, shape index: {}]   ;;  %s456_s3 = inlined_call_operand.vmem [shape: f32[1,128], index: 3, kind: input, shape index: {}]   ;;  %s457_s4 = inlined_call_operand.hbm [shape: f32[16,128], index: 4, kind: output, shape index: {}]  }
   0x1   :  { %10 = vsyncpa [#allocation6], 0 }
   0x2   :  { %11 = vsyncpa [#allocation4], 0  ;;  %s372_s15 = smov [#allocation2]   ;;  %s300_s19 = scalar_lea.hbm %s453_s0, 256 }
   0x3   :  { %s17_s16 = sshll.u32 %s372_s15, 4  ;;  %p301_p0 = scmp.ne.s32.totalorder %s453_s0, %s300_s19  ;;  %s18_s16 = int_to_ptr.vmem [resolvable:$true] %s17_s16 }
   0x4   :  { %p304_p1 = scmp.lt.u32.totalorder %s300_s19, %s453_s0 }
   0x6   :  { %p306_p2 = pnand %p304_p1, %p301_p0 }
   0x8   :  { %309 = shalt.err (!%p306_p2)
}
   0x9   :  { %s310_s24 = scalar_lea.vmem %s18_s16, 256  ;;  %p315_p4 = scmp.lt.s32.totalorder %s18_s16, %s18_s16 }
   0xa   :  { %p311_p3 = scmp.ne.s32.totalorder %s18_s16, %s310_s24  ;;  %p316_p5 = scmp.lt.s32.totalorder %s310_s24, %s310_s24 }
   0xc   :  { %p317_p6 = por %p316_p5, %p315_p4 }
   0xe   :  { %p318_p7 = pnand %p317_p6, %p311_p3 }
  0x10   :  { %321 = shalt.err (!%p318_p7)
}
  0x11   :  { %s373_s25 = smov 128   ;;  %s374_s26 = smov 8  }
  0x12   :  { %23 = dma.hbm_to_vmem [thread:$0]  %s453_s0, 256, %s18_s16, [#allocation3], %s373_s25, %s373_s25, %s374_s26  }
  0x13   :  { %s375_s29 = smov [#allocation5]   ;;  %s322_s7 = scalar_lea.hbm %s454_s1, 2048 }
  0x14   :  { %s29_s30 = sshll.u32 %s375_s29, 4  ;;  %p323_p8 = scmp.ne.s32.totalorder %s454_s1, %s322_s7  ;;  %s30_s30 = int_to_ptr.vmem [resolvable:$true] %s29_s30 }
  0x15   :  { %p326_p9 = scmp.lt.u32.totalorder %s322_s7, %s454_s1 }
  0x17   :  { %p328_p10 = pnand %p326_p9, %p323_p8 }
  0x19   :  { %331 = shalt.err (!%p328_p10)
}
  0x1a   :  { %s332_s12 = scalar_lea.vmem %s30_s30, 2048  ;;  %p337_p12 = scmp.lt.s32.totalorder %s30_s30, %s30_s30 }
  0x1b   :  { %p333_p11 = scmp.ne.s32.totalorder %s30_s30, %s332_s12  ;;  %p338_p13 = scmp.lt.s32.totalorder %s332_s12, %s332_s12 }
  0x1d   :  { %p339_p0 = por %p338_p13, %p337_p12 }
  0x1f   :  { %p340_p1 = pnand %p339_p0, %p333_p11 }
  0x21   :  { %343 = shalt.err (!%p340_p1)
}
  0x22   :  { %35 = dma.hbm_to_vmem [thread:$0]  %s454_s1, 2048, %s30_s30, [#allocation6], %s373_s25, %s373_s25, %s374_s26  }
  0x23   :  { %366 = dma.done.wait [#allocation3], 256  }
  0x24   :  { %367 = vsyncadd [#allocation3], 4294967040 }
  0x25   :  { %368 = dma.done.wait [#allocation6], 2048  }
  0x26   :  { %369 = vsyncadd [#allocation6], 4294965248  ;;  %v48_v0 = vld [vmem:[#allocation5] sm:$0xff]  ;;  %v49_v1 = vld [vmem:[#allocation5 + $0x8] sm:$0xff]  ;;  %v147_v28 = vlaneseq  ;;  %s376_s17 = smov [#allocation7]  }
  0x27   :  { %v50_v2 = vld [vmem:[#allocation5 + $0x10] sm:$0xff]  ;;  %v259_v3 = vpack.c.bf16 %v49_v1, %v48_v0  ;;  %v51_v4 = vld [vmem:[#allocation5 + $0x18] sm:$0xff]  ;;  %v52_v6 = vld [vmem:[#allocation5 + $0x20] sm:$0xff]  ;;  %s191_s18 = sshll.u32 %s376_s17, 4  ;;  %s192_s18 = int_to_ptr.vmem [resolvable:$true] %s191_s18 }
  0x28   :  { %v263_v5 = vpack.c.bf16 %v51_v4, %v50_v2  ;;  %v53_v7 = vld [vmem:[#allocation5 + $0x28] sm:$0xff]  ;;  %v46_v9 = vld [vmem:[#allocation2] sm:$0xff]  ;;  %v55_v11 = vld [vmem:[#allocation5 + $0x38] sm:$0xff]  ;;  %v148_v29 = vand.u32 127, %v147_v28  ;;  %s344_s19 = scalar_lea.vmem %s192_s18, 256  ;;  %p349_p3 = scmp.lt.s32.totalorder %s192_s18, %s192_s18 }
  0x29   :  { %260 = vmatprep.subr.bf16.mxu0 %v259_v3  ;;  %v267_v8 = vpack.c.bf16 %v53_v7, %v52_v6  ;;  %v54_v10 = vld [vmem:[#allocation5 + $0x30] sm:$0xff]  ;;  %256 = vmatprep.mubr.f32.mxu0 %v46_v9  ;;  %v56_v13 = vld [vmem:[#allocation5 + $0x40] sm:$0xff]  ;;  %v57_v14 = vld [vmem:[#allocation5 + $0x48] sm:$0xff]  ;;  %p345_p2 = scmp.ne.s32.totalorder %s192_s18, %s344_s19  ;;  %p350_p4 = scmp.lt.s32.totalorder %s344_s19, %s344_s19 }
  0x2a   :  { %262 = vmatpush3.bf16.msra.mxu0 %v259_v3  ;;  %v271_v12 = vpack.c.bf16 %v55_v11, %v54_v10  ;;  %v275_v15 = vpack.c.bf16 %v57_v14, %v56_v13  ;;  %v58_v16 = vld [vmem:[#allocation5 + $0x50] sm:$0xff]  ;;  %v59_v17 = vld [vmem:[#allocation5 + $0x58] sm:$0xff]  ;;  %v60_v19 = vld [vmem:[#allocation5 + $0x60] sm:$0xff]  ;;  %vm149_vm0 = vcmp.lt.s32.totalorder %v148_v29, 64 }
  0x2b   :  { %264 = vmatprep.subr.bf16.mxu0 %v263_v5  ;;  %v279_v18 = vpack.c.bf16 %v59_v17, %v58_v16  ;;  %v61_v20 = vld [vmem:[#allocation5 + $0x68] sm:$0xff]  ;;  %v62_v22 = vld [vmem:[#allocation5 + $0x70] sm:$0xff]  ;;  %v63_v23 = vld [vmem:[#allocation5 + $0x78] sm:$0xff]  ;;  %p351_p5 = por %p350_p4, %p349_p3 }
  0x2c   :  { %v283_v21 = vpack.c.bf16 %v61_v20, %v60_v19  ;;  %v287_v24 = vpack.c.bf16 %v63_v23, %v62_v22  ;;  %v47_v25 = vld [vmem:[#allocation2 + $0x8] sm:$0xff]  ;;  %v204_v47 = vld [vmem:[%s455_s2] ss:$0 sm:$0xff] }
  0x2d   :  { %v205_v49 = vld [vmem:[%s456_s3] ss:$0 sm:$0xff]  ;;  %p352_p6 = pnand %p351_p5, %p345_p2 }
  0x2e   :  { %266 = vmatpush3.bf16.msra.mxu0 %v263_v5 }
  0x2f   :  { %268 = vmatprep.subr.bf16.mxu0 %v267_v8 }
  0x32   :  { %270 = vmatpush3.bf16.msra.mxu0 %v267_v8 }
  0x33   :  { %272 = vmatprep.subr.bf16.mxu0 %v271_v12 }
  0x36   :  { %274 = vmatpush3.bf16.msra.mxu0 %v271_v12 }
  0x37   :  { %276 = vmatprep.subr.bf16.mxu0 %v275_v15 }
  0x3a   :  { %278 = vmatpush3.bf16.msra.mxu0 %v275_v15 }
  0x3b   :  { %280 = vmatprep.subr.bf16.mxu0 %v279_v18 }
  0x3e   :  { %282 = vmatpush3.bf16.msra.mxu0 %v279_v18 }
  0x3f   :  { %284 = vmatprep.subr.bf16.mxu0 %v283_v21 }
  0x42   :  { %286 = vmatpush3.bf16.msra.mxu0 %v283_v21 }
  0x43   :  { %288 = vmatprep.subr.bf16.mxu0 %v287_v24 }
  0x46   :  { %290 = vmatpush3.bf16.msra.mxu0 %v287_v24 }
  0x49   :  { %257 = vmatmul.mubr.f32.vlgmr.msra.gmra.mrb[0].mxu0 %v47_v25 }
 0x11c   :  { %v258_v26 = vpop.f32.mrb[0].mxu0 }
 0x11d   :  { %v130_v27 = vpop.f32.mrb[1].mxu0 }
 0x11e   :  { %139 = vadd.xlane.f32.xlu0 %v130_v27 }
 0x122   :  { %141 = vadd.xlane.f32.xlu0 %v258_v26 }
 0x1ab   :  { %v140_v30 = vpop.xlane.xlu0 %139 }
 0x1ac   :  { %v143_v31 = vmul.f32 0.015625, %v140_v30 }
 0x1ae   :  { %v145_v32 = vsub.f32 %v130_v27, %v143_v31 }
 0x1af   :  { %v142_v33 = vpop.xlane.xlu0 %141 }
 0x1b0   :  { %v144_v34 = vmul.f32 0.015625, %v142_v33  ;;  %v150_v35 = vsel %vm149_vm0, %v145_v32, 0.0 }
 0x1b1   :  { %v152_v36 = vmul.f32 %v150_v35, %v150_v35 }
 0x1b2   :  { %v146_v37 = vsub.f32 %v258_v26, %v144_v34 }
 0x1b3   :  { %154 = vadd.xlane.f32.xlu1 %v152_v36 }
 0x1b4   :  { %v151_v38 = vsel %vm149_vm0, %v146_v37, 0.0 }
 0x1b5   :  { %v153_v39 = vmul.f32 %v151_v38, %v151_v38 }
 0x1b7   :  { %156 = vadd.xlane.f32.xlu1 %v153_v39 }
 0x240   :  { %v155_v40 = vpop.xlane.xlu1 %154 }
 0x241   :  { %v158_v41 = vmul.f32 0.015625, %v155_v40 }
 0x243   :  { %v160_v42 = vadd.f32 1e-05, %v158_v41 }
 0x244   :  { %v157_v43 = vpop.xlane.xlu1 %156 }
 0x245   :  { %296 = vrsqrt.f32 %v160_v42  ;;  %v159_v44 = vmul.f32 0.015625, %v157_v43 }
 0x247   :  { %v161_v45 = vadd.f32 1e-05, %v159_v44 }
 0x249   :  { %298 = vrsqrt.f32 %v161_v45 }
 0x24f   :  { %v297_v46 = vpop.eup %296 }
 0x250   :  { %v164_v48 = vmul.f32 %v297_v46, %v150_v35 }
 0x252   :  { %v173_v50 = vmul.f32 %v204_v47, %v164_v48 }
 0x253   :  { %v299_v51 = vpop.eup %298 }
 0x254   :  { %v165_v52 = vmul.f32 %v299_v51, %v151_v38  ;;  %v182_v53 = vadd.f32 %v205_v49, %v173_v50 }
 0x256   :  { %v174_v54 = vmul.f32 %v204_v47, %v165_v52  ;;  %184 = vst [vmem:[#allocation7] sm:$0xff] %v182_v53 }
 0x258   :  { %v183_v55 = vadd.f32 %v205_v49, %v174_v54 }
 0x25a   :  { %185 = vst [vmem:[#allocation7 + $0x8] sm:$0xff] %v183_v55 }
 0x25b   :  { %355 = shalt.err (!%p352_p6)
}
 0x25c   :  { %s356_s20 = scalar_lea.hbm %s457_s4, 256 }
 0x25d   :  { %p357_p7 = scmp.ne.s32.totalorder %s457_s4, %s356_s20  ;;  %p360_p8 = scmp.lt.u32.totalorder %s356_s20, %s457_s4 }
 0x25f   :  { %p362_p9 = pnand %p360_p8, %p357_p7 }
 0x261   :  { %365 = shalt.err (!%p362_p9)
}
 0x262   :  { %197 = dma.vmem_to_hbm [thread:$0]  %s192_s18, 256, %s457_s4, [#allocation4], %s373_s25, %s373_s25, %s374_s26  }
 0x263   :  { %370 = dma.done.wait [#allocation4], 256  }
 0x264   :  { %371 = vsyncadd [#allocation4], 4294967040 }
 0x265   :  { %201 = vsyncpa [#allocation3], 1 }
 0x266   :  { %202 = vsyncpa [#allocation6], 1 }
 0x267   :  { %203 = vsyncpa [#allocation4], 1 }

// kernel: tpu_custom_call.1
= control target key start
LH: loop header
LB: loop body
LE: loop exit
PB: predicated region body
PF: predicated region fallthrough
CT: control target
= control target key end

     0   :  { %9 = vsyncpa [#allocation3], 0  ;;  %s453_s0 = inlined_call_operand.hbm [shape: f32[16,128], index: 0, kind: input, shape index: {}]   ;;  %s454_s1 = inlined_call_operand.hbm [shape: f32[128,128], index: 1, kind: input, shape index: {}]   ;;  %s455_s2 = inlined_call_operand.vmem [shape: f32[1,128], index: 2, kind: input, shape index: {}]   ;;  %s456_s3 = inlined_call_operand.vmem [shape: f32[1,128], index: 3, kind: input, shape index: {}]   ;;  %s457_s4 = inlined_call_operand.hbm [shape: f32[16,128], index: 4, kind: output, shape index: {}]  }
   0x1   :  { %10 = vsyncpa [#allocation6], 0 }
   0x2   :  { %11 = vsyncpa [#allocation4], 0  ;;  %s372_s15 = smov [#allocation2]   ;;  %s300_s19 = scalar_lea.hbm %s453_s0, 256 }
   0x3   :  { %s17_s16 = sshll.u32 %s372_s15, 4  ;;  %p301_p0 = scmp.ne.s32.totalorder %s453_s0, %s300_s19  ;;  %s18_s16 = int_to_ptr.vmem [resolvable:$true] %s17_s16 }
   0x4   :  { %p304_p1 = scmp.lt.u32.totalorder %s300_s19, %s453_s0 }
   0x6   :  { %p306_p2 = pnand %p304_p1, %p301_p0 }
   0x8   :  { %309 = shalt.err (!%p306_p2)
}
   0x9   :  { %s310_s24 = scalar_lea.vmem %s18_s16, 256  ;;  %p315_p4 = scmp.lt.s32.totalorder %s18_s16, %s18_s16 }
   0xa   :  { %p311_p3 = scmp.ne.s32.totalorder %s18_s16, %s310_s24  ;;  %p316_p5 = scmp.lt.s32.totalorder %s310_s24, %s310_s24 }
   0xc   :  { %p317_p6 = por %p316_p5, %p315_p4 }
   0xe   :  { %p318_p7 = pnand %p317_p6, %p311_p3 }
  0x10   :  { %321 = shalt.err (!%p318_p7)
}
  0x11   :  { %s373_s25 = smov 128   ;;  %s374_s26 = smov 8  }
  0x12   :  { %23 = dma.hbm_to_vmem [thread:$0]  %s453_s0, 256, %s18_s16, [#allocation3], %s373_s25, %s373_s25, %s374_s26  }
  0x13   :  { %s375_s29 = smov [#allocation5]   ;;  %s322_s7 = scalar_lea.hbm %s454_s1, 2048 }
  0x14   :  { %s29_s30 = sshll.u32 %s375_s29, 4  ;;  %p323_p8 = scmp.ne.s32.totalorder %s454_s1, %s322_s7  ;;  %s30_s30 = int_to_ptr.vmem [resolvable:$true] %s29_s30 }
  0x15   :  { %p326_p9 = scmp.lt.u32.totalorder %s322_s7, %s454_s1 }
  0x17   :  { %p328_p10 = pnand %p326_p9, %p323_p8 }
  0x19   :  { %331 = shalt.err (!%p328_p10)
}
  0x1a   :  { %s332_s12 = scalar_lea.vmem %s30_s30, 2048  ;;  %p337_p12 = scmp.lt.s32.totalorder %s30_s30, %s30_s30 }
  0x1b   :  { %p333_p11 = scmp.ne.s32.totalorder %s30_s30, %s332_s12  ;;  %p338_p13 = scmp.lt.s32.totalorder %s332_s12, %s332_s12 }
  0x1d   :  { %p339_p0 = por %p338_p13, %p337_p12 }
  0x1f   :  { %p340_p1 = pnand %p339_p0, %p333_p11 }
  0x21   :  { %343 = shalt.err (!%p340_p1)
}
  0x22   :  { %35 = dma.hbm_to_vmem [thread:$0]  %s454_s1, 2048, %s30_s30, [#allocation6], %s373_s25, %s373_s25, %s374_s26  }
  0x23   :  { %366 = dma.done.wait [#allocation3], 256  }
  0x24   :  { %367 = vsyncadd [#allocation3], 4294967040 }
  0x25   :  { %368 = dma.done.wait [#allocation6], 2048  }
  0x26   :  { %369 = vsyncadd [#allocation6], 4294965248  ;;  %v48_v0 = vld [vmem:[#allocation5] sm:$0xff]  ;;  %v49_v1 = vld [vmem:[#allocation5 + $0x8] sm:$0xff]  ;;  %v147_v28 = vlaneseq  ;;  %s376_s17 = smov [#allocation7]  }
  0x27   :  { %v50_v2 = vld [vmem:[#allocation5 + $0x10] sm:$0xff]  ;;  %v259_v3 = vpack.c.bf16 %v49_v1, %v48_v0  ;;  %v51_v4 = vld [vmem:[#allocation5 + $0x18] sm:$0xff]  ;;  %v52_v6 = vld [vmem:[#allocation5 + $0x20] sm:$0xff]  ;;  %s191_s18 = sshll.u32 %s376_s17, 4  ;;  %s192_s18 = int_to_ptr.vmem [resolvable:$true] %s191_s18 }
  0x28   :  { %v263_v5 = vpack.c.bf16 %v51_v4, %v50_v2  ;;  %v53_v7 = vld [vmem:[#allocation5 + $0x28] sm:$0xff]  ;;  %v46_v9 = vld [vmem:[#allocation2] sm:$0xff]  ;;  %v55_v11 = vld [vmem:[#allocation5 + $0x38] sm:$0xff]  ;;  %v148_v29 = vand.u32 127, %v147_v28  ;;  %s344_s19 = scalar_lea.vmem %s192_s18, 256  ;;  %p349_p3 = scmp.lt.s32.totalorder %s192_s18, %s192_s18 }
  0x29   :  { %260 = vmatprep.subr.bf16.mxu0 %v259_v3  ;;  %v267_v8 = vpack.c.bf16 %v53_v7, %v52_v6  ;;  %v54_v10 = vld [vmem:[#allocation5 + $0x30] sm:$0xff]  ;;  %256 = vmatprep.mubr.f32.mxu0 %v46_v9  ;;  %v56_v13 = vld [vmem:[#allocation5 + $0x40] sm:$0xff]  ;;  %v57_v14 = vld [vmem:[#allocation5 + $0x48] sm:$0xff]  ;;  %p345_p2 = scmp.ne.s32.totalorder %s192_s18, %s344_s19  ;;  %p350_p4 = scmp.lt.s32.totalorder %s344_s19, %s344_s19 }
  0x2a   :  { %262 = vmatpush3.bf16.msra.mxu0 %v259_v3  ;;  %v271_v12 = vpack.c.bf16 %v55_v11, %v54_v10  ;;  %v275_v15 = vpack.c.bf16 %v57_v14, %v56_v13  ;;  %v58_v16 = vld [vmem:[#allocation5 + $0x50] sm:$0xff]  ;;  %v59_v17 = vld [vmem:[#allocation5 + $0x58] sm:$0xff]  ;;  %v60_v19 = vld [vmem:[#allocation5 + $0x60] sm:$0xff]  ;;  %vm149_vm0 = vcmp.lt.s32.totalorder %v148_v29, 64 }
  0x2b   :  { %264 = vmatprep.subr.bf16.mxu0 %v263_v5  ;;  %v279_v18 = vpack.c.bf16 %v59_v17, %v58_v16  ;;  %v61_v20 = vld [vmem:[#allocation5 + $0x68] sm:$0xff]  ;;  %v62_v22 = vld [vmem:[#allocation5 + $0x70] sm:$0xff]  ;;  %v63_v23 = vld [vmem:[#allocation5 + $0x78] sm:$0xff]  ;;  %p351_p5 = por %p350_p4, %p349_p3 }
  0x2c   :  { %v283_v21 = vpack.c.bf16 %v61_v20, %v60_v19  ;;  %v287_v24 = vpack.c.bf16 %v63_v23, %v62_v22  ;;  %v47_v25 = vld [vmem:[#allocation2 + $0x8] sm:$0xff]  ;;  %v204_v47 = vld [vmem:[%s455_s2] ss:$0 sm:$0xff] }
  0x2d   :  { %v205_v49 = vld [vmem:[%s456_s3] ss:$0 sm:$0xff]  ;;  %p352_p6 = pnand %p351_p5, %p345_p2 }
  0x2e   :  { %266 = vmatpush3.bf16.msra.mxu0 %v263_v5 }
  0x2f   :  { %268 = vmatprep.subr.bf16.mxu0 %v267_v8 }
  0x32   :  { %270 = vmatpush3.bf16.msra.mxu0 %v267_v8 }
  0x33   :  { %272 = vmatprep.subr.bf16.mxu0 %v271_v12 }
  0x36   :  { %274 = vmatpush3.bf16.msra.mxu0 %v271_v12 }
  0x37   :  { %276 = vmatprep.subr.bf16.mxu0 %v275_v15 }
  0x3a   :  { %278 = vmatpush3.bf16.msra.mxu0 %v275_v15 }
  0x3b   :  { %280 = vmatprep.subr.bf16.mxu0 %v279_v18 }
  0x3e   :  { %282 = vmatpush3.bf16.msra.mxu0 %v279_v18 }
  0x3f   :  { %284 = vmatprep.subr.bf16.mxu0 %v283_v21 }
  0x42   :  { %286 = vmatpush3.bf16.msra.mxu0 %v283_v21 }
  0x43   :  { %288 = vmatprep.subr.bf16.mxu0 %v287_v24 }
  0x46   :  { %290 = vmatpush3.bf16.msra.mxu0 %v287_v24 }
  0x49   :  { %257 = vmatmul.mubr.f32.vlgmr.msra.gmra.mrb[0].mxu0 %v47_v25 }
 0x11c   :  { %v258_v26 = vpop.f32.mrb[0].mxu0 }
 0x11d   :  { %v130_v27 = vpop.f32.mrb[1].mxu0 }
 0x11e   :  { %139 = vadd.xlane.f32.xlu0 %v130_v27 }
 0x122   :  { %141 = vadd.xlane.f32.xlu0 %v258_v26 }
 0x1ab   :  { %v140_v30 = vpop.xlane.xlu0 %139 }
 0x1ac   :  { %v143_v31 = vmul.f32 0.015625, %v140_v30 }
 0x1ae   :  { %v145_v32 = vsub.f32 %v130_v27, %v143_v31 }
 0x1af   :  { %v142_v33 = vpop.xlane.xlu0 %141 }
 0x1b0   :  { %v144_v34 = vmul.f32 0.015625, %v142_v33  ;;  %v150_v35 = vsel %vm149_vm0, %v145_v32, 0.0 }
 0x1b1   :  { %v152_v36 = vmul.f32 %v150_v35, %v150_v35 }
 0x1b2   :  { %v146_v37 = vsub.f32 %v258_v26, %v144_v34 }
 0x1b3   :  { %154 = vadd.xlane.f32.xlu1 %v152_v36 }
 0x1b4   :  { %v151_v38 = vsel %vm149_vm0, %v146_v37, 0.0 }
 0x1b5   :  { %v153_v39 = vmul.f32 %v151_v38, %v151_v38 }
 0x1b7   :  { %156 = vadd.xlane.f32.xlu1 %v153_v39 }
 0x240   :  { %v155_v40 = vpop.xlane.xlu1 %154 }
 0x241   :  { %v158_v41 = vmul.f32 0.015625, %v155_v40 }
 0x243   :  { %v160_v42 = vadd.f32 1e-05, %v158_v41 }
 0x244   :  { %v157_v43 = vpop.xlane.xlu1 %156 }
 0x245   :  { %296 = vrsqrt.f32 %v160_v42  ;;  %v159_v44 = vmul.f32 0.015625, %v157_v43 }
 0x247   :  { %v161_v45 = vadd.f32 1e-05, %v159_v44 }
 0x249   :  { %298 = vrsqrt.f32 %v161_v45 }
 0x24f   :  { %v297_v46 = vpop.eup %296 }
 0x250   :  { %v164_v48 = vmul.f32 %v297_v46, %v150_v35 }
 0x252   :  { %v173_v50 = vmul.f32 %v204_v47, %v164_v48 }
 0x253   :  { %v299_v51 = vpop.eup %298 }
 0x254   :  { %v165_v52 = vmul.f32 %v299_v51, %v151_v38  ;;  %v182_v53 = vadd.f32 %v205_v49, %v173_v50 }
 0x256   :  { %v174_v54 = vmul.f32 %v204_v47, %v165_v52  ;;  %184 = vst [vmem:[#allocation7] sm:$0xff] %v182_v53 }
 0x258   :  { %v183_v55 = vadd.f32 %v205_v49, %v174_v54 }
 0x25a   :  { %185 = vst [vmem:[#allocation7 + $0x8] sm:$0xff] %v183_v55 }
 0x25b   :  { %355 = shalt.err (!%p352_p6)
}
 0x25c   :  { %s356_s20 = scalar_lea.hbm %s457_s4, 256 }
 0x25d   :  { %p357_p7 = scmp.ne.s32.totalorder %s457_s4, %s356_s20  ;;  %p360_p8 = scmp.lt.u32.totalorder %s356_s20, %s457_s4 }
 0x25f   :  { %p362_p9 = pnand %p360_p8, %p357_p7 }
 0x261   :  { %365 = shalt.err (!%p362_p9)
}
 0x262   :  { %197 = dma.vmem_to_hbm [thread:$0]  %s192_s18, 256, %s457_s4, [#allocation4], %s373_s25, %s373_s25, %s374_s26  }
 0x263   :  { %370 = dma.done.wait [#allocation4], 256  }
 0x264   :  { %371 = vsyncadd [#allocation4], 4294967040 }
 0x265   :  { %201 = vsyncpa [#allocation3], 1 }
 0x266   :  { %202 = vsyncpa [#allocation6], 1 }
 0x267   :  { %203 = vsyncpa [#allocation4], 1 }

</bundles_post_ra>
